<compile_context>
chip_gen: v5e
topology: v5e:2x2
jax: 0.10.0
libtpu: 0.0.40
codegen_flags: <defaults>
</compile_context>

<pallas_src>
import numpy as np

import jax
import jax.numpy as jnp
from jax.experimental import pallas as pl
from jax.experimental.pallas import tpu as pltpu


# ---------------------------------------------------------------------------
# Fused kernel body: one matmul -> sin/cos -> one matmul
# ---------------------------------------------------------------------------

def _fused_kernel(x_ref, w_in_ref, b_in_ref, w3_ref, b3_ref, out_ref):
    f32 = jnp.float32
    # stage 1: folded (gather + crop + Linear chain + conv1|conv2) dense matmul
    t = jnp.dot(x_ref[...], w_in_ref[...], preferred_element_type=f32) + b_in_ref[...]
    c1 = t.shape[-1] // 2                       # 128-lane aligned split point
    y = jnp.sin(t[:, :c1]) + jnp.cos(t[:, c1:])
    # stage 2: conv3 as dense matmul -> lane-dense output slab
    out_ref[...] = (jnp.dot(y.astype(w3_ref.dtype), w3_ref[...],
                            preferred_element_type=f32) + b3_ref[...])


# ---------------------------------------------------------------------------
# Host-side weight preparation (one-off, float64): convs -> dense matmuls and
# full fold of the activation-free affine chain.
# ---------------------------------------------------------------------------

def _round_up(n, m):
    return ((n + m - 1) // m) * m


def _conv_selector(in_hw, out_hw, ksize, pad):
    """0/1 tensor S[ki,kj,pin,pout] = 1 iff input position pin feeds output
    position pout through tap (ki,kj) of a kxk conv with `pad` zero padding."""
    hi, wi = in_hw
    ho, wo = out_hw
    s = np.zeros((ksize, ksize, hi * wi, ho * wo), np.float64)
    for oi in range(ho):
        for oj in range(wo):
            for ki in range(ksize):
                for kj in range(ksize):
                    ii, jj = oi - pad + ki, oj - pad + kj
                    if 0 <= ii < hi and 0 <= jj < wi:
                        s[ki, kj, ii * wi + jj, oi * wo + oj] = 1.0
    return s


def _selection_matrices(C, H, W):
    """0/1 matrices mapping flattened x (C*H*W) -> k_feat (border gather) and
    -> x_crop (2x2 center crop), matching the module's index_select/cat order."""
    CHW = C * H * W
    border = [0, 1, H - 2, H - 1]            # module derives both gathers from H
    fin = C * H * 4 + C * 4 * W
    s_g = np.zeros((CHW, fin), np.float64)
    col = 0
    for c in range(C):                       # torch.index_select(x, -1, border)
        for i in range(H):
            for b in border:
                s_g[c * H * W + i * W + b, col] = 1.0
                col += 1
    for c in range(C):                       # torch.index_select(x, -2, border)
        for b in border:
            for j in range(W):
                s_g[c * H * W + b * W + j, col] = 1.0
                col += 1
    assert col == fin
    s_c = np.zeros((CHW, C * 4), np.float64)
    for c in range(C):                       # x[..., 2:4, 2:4] channel-major
        for p, (i, j) in enumerate(((2, 2), (2, 3), (3, 2), (3, 3))):
            s_c[c * H * W + i * W + j, c * 4 + p] = 1.0
    return s_g, s_c


def prepare_weights(params, hidden, x_shape, operand_dtype=jnp.float32):
    """Fold every affine stage into two dense matrices (host, float64, one-off)."""
    h = hidden
    _, C, H, W = x_shape
    assert C == h, "module requires input channels == hidden_size"
    g = lambda k: np.asarray(params[k], np.float64)

    s12 = _conv_selector((2, 2), (3, 3), 2, 1)   # conv1/conv2: 2x2 -> 3x3, pad 1
    s3 = _conv_selector((3, 3), (2, 2), 2, 0)    # conv3      : 3x3 -> 2x2, pad 0
    # (Cout,Cin,kh,kw) -> dense (Cin*HWin, Cout*HWout), out-channel-major columns
    w1d = np.einsum('ocij,ijpq->cpoq', g('conv1_w'), s12).reshape(8 * h, 9 * h)
    w2d = np.einsum('ocij,ijpq->cpoq', g('conv2_w'), s12).reshape(8 * h, 9 * h)
    # conv3 dense with position-major output columns (pout*h + cout)
    w3d = np.einsum('ocij,ijpq->cpqo', g('conv3_w'), s3).reshape(9 * h, 4 * h)

    c1 = _round_up(9 * h, 128)        # lane-aligned sin/cos split point
    c4 = _round_up(4 * h, 128)        # lane-dense output slab width

    # conv1 | conv2 fused on the output axis, each half padded to 128 lanes
    w12 = np.zeros((8 * h, 2 * c1), np.float64)
    w12[:, :9 * h] = w1d
    w12[:, c1:c1 + 9 * h] = w2d
    b12 = np.zeros((2 * c1,), np.float64)
    b12[:9 * h] = np.repeat(g('conv1_b'), 9)
    b12[c1:c1 + 9 * h] = np.repeat(g('conv2_b'), 9)
    wx, wk = w12[:4 * h], w12[4 * h:]   # x-crop channel rows / k channel rows

    # fold border gather + the two Linears (no nonlinearity between them and the
    # conv) + the 2x2 crop into one input-side weight and bias
    s_gather, s_crop = _selection_matrices(C, H, W)
    lin = g('lin1_w') @ g('lin2_w')                               # (fin, 4h)
    w_in = s_crop @ wx + s_gather @ (lin @ wk)                    # (CHW, 2*c1)
    b_in = b12 + (g('lin1_b') @ g('lin2_w') + g('lin2_b')) @ wk   # (2*c1,)

    # conv3 dense, padded lane-dense
    w3p = np.zeros((c1, c4), np.float64)
    w3p[:9 * h, :4 * h] = w3d
    b3p = np.zeros((c4,), np.float64)
    b3p[:4 * h] = np.tile(g('conv3_b'), 4)

    return (jnp.asarray(w_in, operand_dtype),
            jnp.asarray(b_in.reshape(1, -1), jnp.float32),
            jnp.asarray(w3p, operand_dtype),
            jnp.asarray(b3p.reshape(1, -1), jnp.float32))


# ---------------------------------------------------------------------------
# Forward
# ---------------------------------------------------------------------------

def _choose_bm(B):
    if B < 16:
        return _round_up(B, 8)                      # single step, >= 8 sublanes
    # >= 2 grid steps (v7x megacore), multiple of 16 (bf16 sublane pack),
    # capped at 512 rows (pipelined tiles near the HBM roofline, tiny VMEM).
    return min(512, _round_up((B + 1) // 2, 16))


def shared_attention_forward(x, w_in, b_in, w3, b3, hidden, *, bm=None):
    B, C, H, W = x.shape
    CHW = C * H * W
    c1, c4 = w3.shape
    h = hidden

    x_flat = x.reshape(B, CHW).astype(w_in.dtype)   # kernel reads x exactly once
    bm = _choose_bm(B) if bm is None else bm
    Bp = _round_up(B, bm)
    if Bp != B:
        x_flat = jnp.pad(x_flat, ((0, Bp - B), (0, 0)))
    grid = (Bp // bm,)

    itm = x_flat.dtype.itemsize
    weight_bytes = (w_in.size + w3.size) * itm + (b_in.size + b3.size) * 4
    block_bytes = bm * CHW * itm + bm * c4 * 4
    # TODO(synk): mark the constant weight specs pipeline_mode=pl.Buffered(1)
    # (single buffer) once that path is stable; their constant index_map already
    # avoids re-DMA across grid steps.
    vmem_limit = int(min(64 << 20, max(4 * (weight_bytes + block_bytes), 32 << 20)))

    cost = pl.CostEstimate(
        flops=2 * Bp * (CHW * 2 * c1 + c1 * c4),
        transcendentals=2 * Bp * c1,
        bytes_accessed=int(Bp * CHW * itm + Bp * c4 * 4 + weight_bytes))

    def rows(cols):
        return pl.BlockSpec((bm, cols), lambda i: (i, 0))

    def whole(a):
        return pl.BlockSpec(a.shape, lambda i: (0, 0))

    out = pl.pallas_call(
        _fused_kernel,
        out_shape=jax.ShapeDtypeStruct((Bp, c4), jnp.float32),
        grid=grid,
        in_specs=[rows(CHW), whole(w_in), whole(b_in), whole(w3), whole(b3)],
        out_specs=rows(c4),
        compiler_params=pltpu.CompilerParams(
            dimension_semantics=("parallel",),
            vmem_limit_bytes=vmem_limit),
        cost_estimate=cost,
    )(x_flat, w_in, b_in, w3, b3)

    out = out[:B]
    # output slab columns are position-major (p*h + c); slice into the 4 outputs
    return [out[:, p * h:(p + 1) * h] for p in range(4)]


# ---------------------------------------------------------------------------
# Parameter init + pure-JAX reference (module-faithful, for correctness check)
# ---------------------------------------------------------------------------

def init_params(key, img_length, hidden):
    ks = jax.random.split(key, 10)
    s = 0.1
    fin = hidden * 4 * img_length * 2
    return {
        'conv1_w': s * jax.random.normal(ks[0], (hidden, 2 * hidden, 2, 2), jnp.float32),
        'conv1_b': s * jax.random.normal(ks[1], (hidden,), jnp.float32),
        'conv2_w': s * jax.random.normal(ks[2], (hidden, 2 * hidden, 2, 2), jnp.float32),
        'conv2_b': s * jax.random.normal(ks[3], (hidden,), jnp.float32),
        'conv3_w': s * jax.random.normal(ks[4], (hidden, hidden, 2, 2), jnp.float32),
        'conv3_b': s * jax.random.normal(ks[5], (hidden,), jnp.float32),
        'lin1_w': s * jax.random.normal(ks[6], (fin, hidden), jnp.float32),
        'lin1_b': s * jax.random.normal(ks[7], (hidden,), jnp.float32),
        'lin2_w': s * jax.random.normal(ks[8], (hidden, 4 * hidden), jnp.float32),
        'lin2_b': s * jax.random.normal(ks[9], (4 * hidden,), jnp.float32),
    }


def _conv2d_ref(x, w, b, pad):
    out = jax.lax.conv_general_dilated(
        x, w, window_strides=(1, 1), padding=[(pad, pad), (pad, pad)],
        dimension_numbers=('NCHW', 'OIHW', 'NCHW'))
    return out + b[None, :, None, None]


def reference_forward(x, params, hidden):
    B, C, H, W = x.shape
    border = jnp.array([0, 1, H - 2, H - 1], dtype=jnp.int32)
    k = jnp.concatenate(
        [x[..., border].reshape(B, -1), x[:, :, border, :].reshape(B, -1)], axis=-1)
    k = k @ params['lin1_w'] + params['lin1_b']
    k = k @ params['lin2_w'] + params['lin2_b']
    k = k.reshape(B, hidden, 2, 2)
    z = jnp.concatenate([x[..., 2:4, 2:4], k], axis=1)
    y = (jnp.sin(_conv2d_ref(z, params['conv1_w'], params['conv1_b'], 1))
         + jnp.cos(_conv2d_ref(z, params['conv2_w'], params['conv2_b'], 1)))
    y = _conv2d_ref(y, params['conv3_w'], params['conv3_b'], 0)
    out = jnp.transpose(y.reshape(B, C, -1), (0, 2, 1))
    return [out[:, i, :] for i in range(4)]


# ---------------------------------------------------------------------------

if __name__ == "__main__":
    B = 2
    hidden = 8           # == input channels C
    img_length = 8       # == H == W

    key = jax.random.PRNGKey(0)
    kx, kp = jax.random.split(key)
    x = jax.random.normal(kx, (B, hidden, img_length, img_length), jnp.float32)
    params = init_params(kp, img_length, hidden)

    refs = jax.block_until_ready(reference_forward(x, params, hidden))

    # f32 matmul operands.  The prep-time fold changes accumulation order and the
    # reference goes through XLA's own matmul/conv path (whose default TPU matmul
    # precision may use bf16 passes), so compare at 1e-2; layout / selector bugs
    # would show up at O(0.1)+.
    w_in, b_in, w3, b3 = prepare_weights(params, hidden, x.shape, jnp.float32)
    fwd = jax.jit(lambda xx: shared_attention_forward(xx, w_in, b_in, w3, b3, hidden))
    outs = jax.block_until_ready(fwd(x))
    for o, r in zip(outs, refs):
        assert o.shape == (B, hidden), o.shape
        err = float(jnp.max(jnp.abs(o - r)))
        assert jnp.allclose(o, r, atol=1e-2, rtol=1e-2), err

    # bf16 matmul operands with f32 accumulation (perf path) -- looser tolerance.
    w_in16, b_in16, w316, b316 = prepare_weights(params, hidden, x.shape, jnp.bfloat16)
    fwd16 = jax.jit(
        lambda xx: shared_attention_forward(xx, w_in16, b_in16, w316, b316, hidden))
    outs16 = jax.block_until_ready(fwd16(x))
    for o, r in zip(outs16, refs):
        assert o.shape == (B, hidden), o.shape
        err = float(jnp.max(jnp.abs(o - r)))
        assert jnp.allclose(o, r, atol=1e-1, rtol=1e-1), err

    print("KERNEL_OK")
</pallas_src>

<mosaic_0001>
module attributes {stable_mosaic.version = 11 : i64} {
  func.func @_fused_kernel(%arg0: i32, %arg1: memref<8x512xf32, #tpu.memory_space<vmem>>, %arg2: memref<512x256xf32, #tpu.memory_space<vmem>>, %arg3: memref<1x256xf32, #tpu.memory_space<vmem>>, %arg4: memref<128x128xf32, #tpu.memory_space<vmem>>, %arg5: memref<1x128xf32, #tpu.memory_space<vmem>>, %arg6: memref<8x128xf32, #tpu.memory_space<vmem>>) attributes {dimension_semantics = [#tpu.dimension_semantics<parallel>], iteration_bounds = array<i64: 1>, scalar_prefetch = 0 : i64, scratch_operands = 0 : i64, tpu.core_type = #tpu.core_type<tc>, window_params = [{transform_indices = @transform_0, window_bounds = array<i64: 8, 512>}, {pipeline_mode = #tpu.pipeline_mode<synchronous>, transform_indices = @transform_1, window_bounds = array<i64: 512, 256>}, {pipeline_mode = #tpu.pipeline_mode<synchronous>, transform_indices = @transform_2, window_bounds = array<i64: 1, 256>}, {pipeline_mode = #tpu.pipeline_mode<synchronous>, transform_indices = @transform_3, window_bounds = array<i64: 128, 128>}, {pipeline_mode = #tpu.pipeline_mode<synchronous>, transform_indices = @transform_4, window_bounds = array<i64: 1, 128>}, {transform_indices = @transform_5, window_bounds = array<i64: 8, 128>}]} {
    %c0 = arith.constant 0 : index
    %c0_0 = arith.constant 0 : index
    %0 = vector.load %arg1[%c0, %c0_0] : memref<8x512xf32, #tpu.memory_space<vmem>>, vector<8x512xf32>
    %c0_1 = arith.constant 0 : index
    %c0_2 = arith.constant 0 : index
    %1 = vector.load %arg2[%c0_1, %c0_2] : memref<512x256xf32, #tpu.memory_space<vmem>>, vector<512x256xf32>
    %cst = arith.constant dense<0.000000e+00> : vector<8x256xf32>
    %2 = tpu.matmul %0, %1, %cst {dimension_numbers = #tpu.dot_dimension_numbers<[1], [0], [0], [1], [0, 0, 1, 1], [], []>} : vector<8x512xf32>, vector<512x256xf32>, vector<8x256xf32> -> vector<8x256xf32>
    %c0_3 = arith.constant 0 : index
    %c0_4 = arith.constant 0 : index
    %3 = vector.load %arg3[%c0_3, %c0_4] : memref<1x256xf32, #tpu.memory_space<vmem>>, vector<1x256xf32>
    %4 = vector.broadcast %3 : vector<1x256xf32> to vector<8x256xf32>
    %5 = arith.addf %2, %4 : vector<8x256xf32>
    %6 = vector.extract_strided_slice %5 {offsets = [0, 0], sizes = [8, 128], strides = [1, 1]} : vector<8x256xf32> to vector<8x128xf32>
    %7 = math.sin %6 : vector<8x128xf32>
    %8 = vector.extract_strided_slice %5 {offsets = [0, 128], sizes = [8, 128], strides = [1, 1]} : vector<8x256xf32> to vector<8x128xf32>
    %9 = math.cos %8 : vector<8x128xf32>
    %10 = arith.addf %7, %9 : vector<8x128xf32>
    %c0_5 = arith.constant 0 : index
    %c0_6 = arith.constant 0 : index
    %11 = vector.load %arg4[%c0_5, %c0_6] : memref<128x128xf32, #tpu.memory_space<vmem>>, vector<128x128xf32>
    %cst_7 = arith.constant dense<0.000000e+00> : vector<8x128xf32>
    %12 = tpu.matmul %10, %11, %cst_7 {dimension_numbers = #tpu.dot_dimension_numbers<[1], [0], [0], [1], [0, 0, 1, 1], [], []>} : vector<8x128xf32>, vector<128x128xf32>, vector<8x128xf32> -> vector<8x128xf32>
    %c0_8 = arith.constant 0 : index
    %c0_9 = arith.constant 0 : index
    %13 = vector.load %arg5[%c0_8, %c0_9] : memref<1x128xf32, #tpu.memory_space<vmem>>, vector<1x128xf32>
    %14 = vector.broadcast %13 : vector<1x128xf32> to vector<8x128xf32>
    %15 = arith.addf %12, %14 : vector<8x128xf32>
    %c0_10 = arith.constant 0 : index
    %c0_11 = arith.constant 0 : index
    %16 = vector.load %arg6[%c0_10, %c0_11] : memref<8x128xf32, #tpu.memory_space<vmem>>, vector<8x128xf32>
    tpu.vector_store %arg6[%c0_10, %c0_11], %15 {strides = array<i32>} : memref<8x128xf32, #tpu.memory_space<vmem>>, vector<8x128xf32>,
    return
  }
  func.func @transform_0(%arg0: i32) -> (i32, i32) {
    %c0_i32 = arith.constant 0 : i32
    %c0_i32_0 = arith.constant 0 : i32
    return %arg0, %c0_i32 : i32, i32
  }
  func.func @transform_1(%arg0: i32) -> (i32, i32) {
    %c0_i32 = arith.constant 0 : i32
    %c0_i32_0 = arith.constant 0 : i32
    %c0_i32_1 = arith.constant 0 : i32
    return %c0_i32, %c0_i32_0 : i32, i32
  }
  func.func @transform_2(%arg0: i32) -> (i32, i32) {
    %c0_i32 = arith.constant 0 : i32
    %c0_i32_0 = arith.constant 0 : i32
    %c0_i32_1 = arith.constant 0 : i32
    return %c0_i32, %c0_i32_0 : i32, i32
  }
  func.func @transform_3(%arg0: i32) -> (i32, i32) {
    %c0_i32 = arith.constant 0 : i32
    %c0_i32_0 = arith.constant 0 : i32
    %c0_i32_1 = arith.constant 0 : i32
    return %c0_i32, %c0_i32_0 : i32, i32
  }
  func.func @transform_4(%arg0: i32) -> (i32, i32) {
    %c0_i32 = arith.constant 0 : i32
    %c0_i32_0 = arith.constant 0 : i32
    %c0_i32_1 = arith.constant 0 : i32
    return %c0_i32, %c0_i32_0 : i32, i32
  }
  func.func @transform_5(%arg0: i32) -> (i32, i32) {
    %c0_i32 = arith.constant 0 : i32
    %c0_i32_0 = arith.constant 0 : i32
    return %arg0, %c0_i32 : i32, i32
  }
}

</mosaic_0001>

<bundles_post_ra>
// kernel: _lambda_.1
= control target key start
LH: loop header
LB: loop body
LE: loop exit
PB: predicated region body
PF: predicated region fallthrough
CT: control target
= control target key end

     0   :  { %10 = vsyncpa [#allocation3], 0  ;;  %s733_s21 = smov [#allocation2]   ;;  %s734_s23 = smov 256   ;;  %s1062_s0 = inlined_call_operand.vmem [shape: f32[8,512], index: 0, kind: input, shape index: {}]   ;;  %s1063_s1 = inlined_call_operand.hbm [shape: f32[512,256], index: 1, kind: input, shape index: {}]   ;;  %s1064_s2 = inlined_call_operand.vmem [shape: f32[1,256], index: 2, kind: input, shape index: {}]   ;;  %s1065_s3 = inlined_call_operand.vmem [shape: f32[128,128], index: 3, kind: input, shape index: {}]   ;;  %s1066_s4 = inlined_call_operand.vmem [shape: f32[1,128], index: 4, kind: input, shape index: {}]   ;;  %s1067_s5 = inlined_call_operand.vmem [shape: f32[8,128], index: 5, kind: output, shape index: {}]  }
   0x1   :  { %s17_s20 = sshll.u32 %s1063_s1, 4  ;;  %s19_s22 = sshll.u32 %s733_s21, 4  ;;  %s18_s20 = int_to_ptr.hbm [resolvable:$true] %s17_s20  ;;  %s20_s22 = int_to_ptr.vmem [resolvable:$true] %s19_s22 }
   0x2   :  { %s735_s24 = smov 16  }
   0x3   :  { %25 = dma.hbm_to_vmem [thread:$0]  %s18_s20, 16384, %s20_s22, [#allocation3], %s734_s23, %s734_s23, %s735_s24  }
   0x4   :  { %731 = dma.done.wait [#allocation3], 16384  }
   0x5   :  { %732 = vsyncadd [#allocation3], 4294950912  ;;  %v134_v0 = vld [vmem:[#allocation2 + $0x2f0] sm:$0xff]  ;;  %v132_v2 = vld [vmem:[#allocation2 + $0x2e0] sm:$0xff] }
   0x6   :  { %v70_v1 = vld [vmem:[#allocation2 + $0xf0] sm:$0xff]  ;;  %214 = vmatpush.msra.mxu2 %v134_v0  ;;  %v68_v4 = vld [vmem:[#allocation2 + $0xe0] sm:$0xff]  ;;  %v135_v0 = vld [vmem:[#allocation2 + $0x2f8] sm:$0xff] }
   0x7   :  { %174 = vmatpush.msra.mxu0 %v70_v1  ;;  %v166_v3 = vld [vmem:[#allocation2 + $0x3f0] sm:$0xff]  ;;  %v164_v7 = vld [vmem:[#allocation2 + $0x3e0] sm:$0xff] }
   0x8   :  { %v102_v5 = vld [vmem:[#allocation2 + $0x1f0] sm:$0xff]  ;;  %234 = vmatpush.msra.mxu3 %v166_v3  ;;  %215 = vmatpush.msra.mxu2 %v132_v2  ;;  %v100_v9 = vld [vmem:[#allocation2 + $0x1e0] sm:$0xff]  ;;  %v789_v2 = vld [vmem:[%s1062_s0 + $0x18] sm:$0xff] }
   0x9   :  { %194 = vmatpush.msra.mxu1 %v102_v5  ;;  %v130_v6 = vld [vmem:[#allocation2 + $0x2d0] sm:$0xff]  ;;  %175 = vmatpush.msra.mxu0 %v68_v4  ;;  %v128_v11 = vld [vmem:[#allocation2 + $0x2c0] sm:$0xff]  ;;  %v71_v3 = vld [vmem:[#allocation2 + $0xf8] sm:$0xff] }
   0xa   :  { %v66_v8 = vld [vmem:[#allocation2 + $0xd0] sm:$0xff]  ;;  %235 = vmatpush.msra.mxu3 %v164_v7  ;;  %v64_v12 = vld [vmem:[#allocation2 + $0xc0] sm:$0xff]  ;;  %216 = vmatpush.msra.mxu2 %v130_v6  ;;  %v133_v4 = vld [vmem:[#allocation2 + $0x2e8] sm:$0xff] }
   0xb   :  { %v162_v10 = vld [vmem:[#allocation2 + $0x3d0] sm:$0xff]  ;;  %195 = vmatpush.msra.mxu1 %v100_v9  ;;  %176 = vmatpush.msra.mxu0 %v66_v8  ;;  %v160_v14 = vld [vmem:[#allocation2 + $0x3c0] sm:$0xff]  ;;  %v167_v5 = vld [vmem:[#allocation2 + $0x3f8] sm:$0xff] }
   0xc   :  { %v98_v13 = vld [vmem:[#allocation2 + $0x1d0] sm:$0xff]  ;;  %v96_v15 = vld [vmem:[#allocation2 + $0x1c0] sm:$0xff]  ;;  %236 = vmatpush.msra.mxu3 %v162_v10  ;;  %217 = vmatpush.msra.mxu2 %v128_v11  ;;  %v69_v7 = vld [vmem:[#allocation2 + $0xe8] sm:$0xff] }
   0xd   :  { %196 = vmatpush.msra.mxu1 %v98_v13  ;;  %v126_v16 = vld [vmem:[#allocation2 + $0x2b0] sm:$0xff]  ;;  %177 = vmatpush.msra.mxu0 %v64_v12  ;;  %v124_v20 = vld [vmem:[#allocation2 + $0x2a0] sm:$0xff]  ;;  %v797_v8 = vld [vmem:[%s1062_s0 + $0x8] sm:$0xff] }
   0xe   :  { %v62_v17 = vld [vmem:[#allocation2 + $0xb0] sm:$0xff]  ;;  %237 = vmatpush.msra.mxu3 %v160_v14  ;;  %v60_v21 = vld [vmem:[#allocation2 + $0xa0] sm:$0xff]  ;;  %218 = vmatpush.msra.mxu2 %v126_v16  ;;  %v131_v9 = vld [vmem:[#allocation2 + $0x2d8] sm:$0xff] }
   0xf   :  { %v158_v18 = vld [vmem:[#allocation2 + $0x3b0] sm:$0xff]  ;;  %197 = vmatpush.msra.mxu1 %v96_v15  ;;  %178 = vmatpush.msra.mxu0 %v62_v17  ;;  %v156_v22 = vld [vmem:[#allocation2 + $0x3a0] sm:$0xff]  ;;  %v103_v10 = vld [vmem:[#allocation2 + $0x1f8] sm:$0xff] }
  0x10   :  { %v94_v19 = vld [vmem:[#allocation2 + $0x1b0] sm:$0xff]  ;;  %v92_v23 = vld [vmem:[#allocation2 + $0x1a0] sm:$0xff]  ;;  %238 = vmatpush.msra.mxu3 %v158_v18  ;;  %219 = vmatpush.msra.mxu2 %v124_v20  ;;  %v165_v11 = vld [vmem:[#allocation2 + $0x3e8] sm:$0xff] }
  0x11   :  { %198 = vmatpush.msra.mxu1 %v94_v19  ;;  %v122_v24 = vld [vmem:[#allocation2 + $0x290] sm:$0xff]  ;;  %179 = vmatpush.msra.mxu0 %v60_v21  ;;  %v120_v28 = vld [vmem:[#allocation2 + $0x280] sm:$0xff]  ;;  %v67_v12 = vld [vmem:[#allocation2 + $0xd8] sm:$0xff] }
  0x12   :  { %v58_v25 = vld [vmem:[#allocation2 + $0x90] sm:$0xff]  ;;  %239 = vmatpush.msra.mxu3 %v156_v22  ;;  %v56_v29 = vld [vmem:[#allocation2 + $0x80] sm:$0xff]  ;;  %220 = vmatpush.msra.mxu2 %v122_v24  ;;  %v129_v13 = vld [vmem:[#allocation2 + $0x2c8] sm:$0xff] }
  0x13   :  { %v154_v26 = vld [vmem:[#allocation2 + $0x390] sm:$0xff]  ;;  %199 = vmatpush.msra.mxu1 %v92_v23  ;;  %180 = vmatpush.msra.mxu0 %v58_v25  ;;  %v152_v30 = vld [vmem:[#allocation2 + $0x380] sm:$0xff]  ;;  %v101_v14 = vld [vmem:[#allocation2 + $0x1e8] sm:$0xff] }
  0x14   :  { %v90_v27 = vld [vmem:[#allocation2 + $0x190] sm:$0xff]  ;;  %v88_v31 = vld [vmem:[#allocation2 + $0x180] sm:$0xff]  ;;  %240 = vmatpush.msra.mxu3 %v154_v26  ;;  %221 = vmatpush.msra.mxu2 %v120_v28  ;;  %v163_v15 = vld [vmem:[#allocation2 + $0x3d8] sm:$0xff] }
  0x15   :  { %200 = vmatpush.msra.mxu1 %v90_v27  ;;  %v118_v32 = vld [vmem:[#allocation2 + $0x270] sm:$0xff]  ;;  %181 = vmatpush.msra.mxu0 %v56_v29  ;;  %v116_v36 = vld [vmem:[#allocation2 + $0x260] sm:$0xff]  ;;  %v65_v16 = vld [vmem:[#allocation2 + $0xc8] sm:$0xff] }
  0x16   :  { %v54_v33 = vld [vmem:[#allocation2 + $0x70] sm:$0xff]  ;;  %241 = vmatpush.msra.mxu3 %v152_v30  ;;  %v52_v37 = vld [vmem:[#allocation2 + $0x60] sm:$0xff]  ;;  %222 = vmatpush.msra.mxu2 %v118_v32  ;;  %v127_v17 = vld [vmem:[#allocation2 + $0x2b8] sm:$0xff] }
  0x17   :  { %v150_v34 = vld [vmem:[#allocation2 + $0x370] sm:$0xff]  ;;  %201 = vmatpush.msra.mxu1 %v88_v31  ;;  %182 = vmatpush.msra.mxu0 %v54_v33  ;;  %v148_v38 = vld [vmem:[#allocation2 + $0x360] sm:$0xff]  ;;  %v99_v18 = vld [vmem:[#allocation2 + $0x1d8] sm:$0xff] }
  0x18   :  { %v86_v35 = vld [vmem:[#allocation2 + $0x170] sm:$0xff]  ;;  %v84_v39 = vld [vmem:[#allocation2 + $0x160] sm:$0xff]  ;;  %242 = vmatpush.msra.mxu3 %v150_v34  ;;  %223 = vmatpush.msra.mxu2 %v116_v36  ;;  %v161_v19 = vld [vmem:[#allocation2 + $0x3c8] sm:$0xff] }
  0x19   :  { %202 = vmatpush.msra.mxu1 %v86_v35  ;;  %v114_v40 = vld [vmem:[#allocation2 + $0x250] sm:$0xff]  ;;  %183 = vmatpush.msra.mxu0 %v52_v37  ;;  %v112_v44 = vld [vmem:[#allocation2 + $0x240] sm:$0xff]  ;;  %v63_v20 = vld [vmem:[#allocation2 + $0xb8] sm:$0xff] }
  0x1a   :  { %v50_v41 = vld [vmem:[#allocation2 + $0x50] sm:$0xff]  ;;  %243 = vmatpush.msra.mxu3 %v148_v38  ;;  %v48_v45 = vld [vmem:[#allocation2 + $0x40] sm:$0xff]  ;;  %224 = vmatpush.msra.mxu2 %v114_v40  ;;  %v125_v21 = vld [vmem:[#allocation2 + $0x2a8] sm:$0xff] }
  0x1b   :  { %v146_v42 = vld [vmem:[#allocation2 + $0x350] sm:$0xff]  ;;  %203 = vmatpush.msra.mxu1 %v84_v39  ;;  %184 = vmatpush.msra.mxu0 %v50_v41  ;;  %v144_v46 = vld [vmem:[#allocation2 + $0x340] sm:$0xff]  ;;  %v97_v22 = vld [vmem:[#allocation2 + $0x1c8] sm:$0xff] }
  0x1c   :  { %v82_v43 = vld [vmem:[#allocation2 + $0x150] sm:$0xff]  ;;  %v80_v47 = vld [vmem:[#allocation2 + $0x140] sm:$0xff]  ;;  %244 = vmatpush.msra.mxu3 %v146_v42  ;;  %225 = vmatpush.msra.mxu2 %v112_v44  ;;  %v159_v23 = vld [vmem:[#allocation2 + $0x3b8] sm:$0xff] }
  0x1d   :  { %204 = vmatpush.msra.mxu1 %v82_v43  ;;  %v110_v48 = vld [vmem:[#allocation2 + $0x230] sm:$0xff]  ;;  %185 = vmatpush.msra.mxu0 %v48_v45  ;;  %v108_v52 = vld [vmem:[#allocation2 + $0x220] sm:$0xff]  ;;  %v61_v24 = vld [vmem:[#allocation2 + $0xa8] sm:$0xff] }
  0x1e   :  { %v46_v49 = vld [vmem:[#allocation2 + $0x30] sm:$0xff]  ;;  %245 = vmatpush.msra.mxu3 %v144_v46  ;;  %v44_v53 = vld [vmem:[#allocation2 + $0x20] sm:$0xff]  ;;  %226 = vmatpush.msra.mxu2 %v110_v48  ;;  %v123_v25 = vld [vmem:[#allocation2 + $0x298] sm:$0xff] }
  0x1f   :  { %v142_v50 = vld [vmem:[#allocation2 + $0x330] sm:$0xff]  ;;  %205 = vmatpush.msra.mxu1 %v80_v47  ;;  %186 = vmatpush.msra.mxu0 %v46_v49  ;;  %v140_v54 = vld [vmem:[#allocation2 + $0x320] sm:$0xff]  ;;  %v95_v26 = vld [vmem:[#allocation2 + $0x1b8] sm:$0xff] }
  0x20   :  { %v78_v51 = vld [vmem:[#allocation2 + $0x130] sm:$0xff]  ;;  %v76_v55 = vld [vmem:[#allocation2 + $0x120] sm:$0xff]  ;;  %246 = vmatpush.msra.mxu3 %v142_v50  ;;  %227 = vmatpush.msra.mxu2 %v108_v52  ;;  %v157_v27 = vld [vmem:[#allocation2 + $0x3a8] sm:$0xff] }
  0x21   :  { %206 = vmatpush.msra.mxu1 %v78_v51  ;;  %v106_v56 = vld [vmem:[#allocation2 + $0x210] sm:$0xff]  ;;  %187 = vmatpush.msra.mxu0 %v44_v53  ;;  %v104_v60 = vld [vmem:[#allocation2 + $0x200] sm:$0xff]  ;;  %v59_v28 = vld [vmem:[#allocation2 + $0x98] sm:$0xff] }
  0x22   :  { %v42_v57 = vld [vmem:[#allocation2 + $0x10] sm:$0xff]  ;;  %247 = vmatpush.msra.mxu3 %v140_v54  ;;  %v40_v61 = vld [vmem:[#allocation2] sm:$0xff]  ;;  %228 = vmatpush.msra.mxu2 %v106_v56  ;;  %v121_v29 = vld [vmem:[#allocation2 + $0x288] sm:$0xff] }
  0x23   :  { %v138_v58 = vld [vmem:[#allocation2 + $0x310] sm:$0xff]  ;;  %207 = vmatpush.msra.mxu1 %v76_v55  ;;  %188 = vmatpush.msra.mxu0 %v42_v57  ;;  %v136_v63 = vld [vmem:[#allocation2 + $0x300] sm:$0xff]  ;;  %v93_v30 = vld [vmem:[#allocation2 + $0x1a8] sm:$0xff] }
  0x24   :  { %v74_v59 = vld [vmem:[#allocation2 + $0x110] sm:$0xff]  ;;  %248 = vmatpush.msra.mxu3 %v138_v58  ;;  %v784_v1 = vld [vmem:[%s1062_s0] sm:$0xff]  ;;  %229 = vmatpush.msra.mxu2 %v104_v60  ;;  %v155_v31 = vld [vmem:[#allocation2 + $0x398] sm:$0xff] }
  0x25   :  { %v779_v62 = vld [vmem:[%s1062_s0 + $0x10] sm:$0xff]  ;;  %208 = vmatpush.msra.mxu1 %v74_v59  ;;  %189 = vmatpush.msra.mxu0 %v40_v61  ;;  %v72_v6 = vld [vmem:[#allocation2 + $0x100] sm:$0xff]  ;;  %v57_v32 = vld [vmem:[#allocation2 + $0x88] sm:$0xff] }
  0x26   :  { %230 = vmatmul.f32.vlgmr.msra.gmra.mxu2 %v779_v62  ;;  %249 = vmatpush.msra.mxu3 %v136_v63  ;;  %v119_v33 = vld [vmem:[#allocation2 + $0x278] sm:$0xff]  ;;  %v153_v35 = vld [vmem:[#allocation2 + $0x388] sm:$0xff] }
  0x27   :  { %294 = vmatpush.msrb.mxu2 %v135_v0  ;;  %190 = vmatmul.f32.vlgmr.msra.gmra.mxu0 %v784_v1  ;;  %v91_v34 = vld [vmem:[#allocation2 + $0x198] sm:$0xff]  ;;  %v117_v37 = vld [vmem:[#allocation2 + $0x268] sm:$0xff] }
  0x28   :  { %250 = vmatmul.f32.vlgmr.msra.gmra.mxu3 %v789_v2  ;;  %254 = vmatpush.msrb.mxu0 %v71_v3  ;;  %v55_v36 = vld [vmem:[#allocation2 + $0x78] sm:$0xff]  ;;  %v89_v38 = vld [vmem:[#allocation2 + $0x188] sm:$0xff] }
  0x29   :  { %295 = vmatpush.msrb.mxu2 %v133_v4  ;;  %314 = vmatpush.msrb.mxu3 %v167_v5  ;;  %v151_v39 = vld [vmem:[#allocation2 + $0x378] sm:$0xff]  ;;  %v53_v40 = vld [vmem:[#allocation2 + $0x68] sm:$0xff] }
  0x2a   :  { %209 = vmatpush.msra.mxu1 %v72_v6  ;;  %255 = vmatpush.msrb.mxu0 %v69_v7  ;;  %v115_v41 = vld [vmem:[#allocation2 + $0x258] sm:$0xff]  ;;  %v149_v43 = vld [vmem:[#allocation2 + $0x368] sm:$0xff]  ;;  %v807_v7 = vld [vmem:[%s1064_s2] sm:$0x3] }
  0x2b   :  { %210 = vmatmul.f32.vlgmr.msra.gmra.mxu1 %v797_v8  ;;  %296 = vmatpush.msrb.mxu2 %v131_v9  ;;  %v87_v42 = vld [vmem:[#allocation2 + $0x178] sm:$0xff]  ;;  %v113_v45 = vld [vmem:[#allocation2 + $0x248] sm:$0xff]  ;;  %v170_v9 = vperm.slane %v807_v7, 0 }
  0x2c   :  { %274 = vmatpush.msrb.mxu1 %v103_v10  ;;  %315 = vmatpush.msrb.mxu3 %v165_v11  ;;  %v51_v44 = vld [vmem:[#allocation2 + $0x58] sm:$0xff]  ;;  %v85_v46 = vld [vmem:[#allocation2 + $0x168] sm:$0xff] }
  0x2d   :  { %256 = vmatpush.msrb.mxu0 %v67_v12  ;;  %297 = vmatpush.msrb.mxu2 %v129_v13  ;;  %v147_v47 = vld [vmem:[#allocation2 + $0x358] sm:$0xff]  ;;  %v49_v48 = vld [vmem:[#allocation2 + $0x48] sm:$0xff] }
  0x2e   :  { %275 = vmatpush.msrb.mxu1 %v101_v14  ;;  %316 = vmatpush.msrb.mxu3 %v163_v15  ;;  %v111_v49 = vld [vmem:[#allocation2 + $0x238] sm:$0xff]  ;;  %v145_v51 = vld [vmem:[#allocation2 + $0x348] sm:$0xff] }
  0x2f   :  { %257 = vmatpush.msrb.mxu0 %v65_v16  ;;  %298 = vmatpush.msrb.mxu2 %v127_v17  ;;  %v83_v50 = vld [vmem:[#allocation2 + $0x158] sm:$0xff]  ;;  %v109_v53 = vld [vmem:[#allocation2 + $0x228] sm:$0xff] }
  0x30   :  { %276 = vmatpush.msrb.mxu1 %v99_v18  ;;  %317 = vmatpush.msrb.mxu3 %v161_v19  ;;  %v47_v52 = vld [vmem:[#allocation2 + $0x38] sm:$0xff]  ;;  %v81_v54 = vld [vmem:[#allocation2 + $0x148] sm:$0xff] }
  0x31   :  { %258 = vmatpush.msrb.mxu0 %v63_v20  ;;  %299 = vmatpush.msrb.mxu2 %v125_v21  ;;  %v143_v55 = vld [vmem:[#allocation2 + $0x338] sm:$0xff]  ;;  %v45_v56 = vld [vmem:[#allocation2 + $0x28] sm:$0xff] }
  0x32   :  { %277 = vmatpush.msrb.mxu1 %v97_v22  ;;  %318 = vmatpush.msrb.mxu3 %v159_v23  ;;  %v107_v57 = vld [vmem:[#allocation2 + $0x218] sm:$0xff]  ;;  %v141_v59 = vld [vmem:[#allocation2 + $0x328] sm:$0xff] }
  0x33   :  { %259 = vmatpush.msrb.mxu0 %v61_v24  ;;  %300 = vmatpush.msrb.mxu2 %v123_v25  ;;  %v79_v58 = vld [vmem:[#allocation2 + $0x138] sm:$0xff]  ;;  %v105_v61 = vld [vmem:[#allocation2 + $0x208] sm:$0xff]  ;;  %v736_v25 = vmov 683565275  }
  0x34   :  { %278 = vmatpush.msrb.mxu1 %v95_v26  ;;  %319 = vmatpush.msrb.mxu3 %v157_v27  ;;  %v43_v60 = vld [vmem:[#allocation2 + $0x18] sm:$0xff]  ;;  %v77_v63 = vld [vmem:[#allocation2 + $0x128] sm:$0xff]  ;;  %v737_v27 = vmov 2475754826  }
  0x35   :  { %260 = vmatpush.msrb.mxu0 %v59_v28  ;;  %301 = vmatpush.msrb.mxu2 %v121_v29  ;;  %v139_v0 = vld [vmem:[#allocation2 + $0x318] sm:$0xff]  ;;  %v41_v3 = vld [vmem:[#allocation2 + $0x8] sm:$0xff]  ;;  %v738_v29 = vmov 2131351028  }
  0x36   :  { %279 = vmatpush.msrb.mxu1 %v93_v30  ;;  %320 = vmatpush.msrb.mxu3 %v155_v31  ;;  %v75_v4 = vld [vmem:[#allocation2 + $0x118] sm:$0xff]  ;;  %v137_v5 = vld [vmem:[#allocation2 + $0x308] sm:$0xff]  ;;  %v739_v31 = vmov 2102212464  }
  0x37   :  { %261 = vmatpush.msrb.mxu0 %v57_v32  ;;  %302 = vmatpush.msrb.mxu2 %v119_v33  ;;  %v73_v6 = vld [vmem:[#allocation2 + $0x108] sm:$0xff]  ;;  %v740_v33 = vmov 920167782  }
  0x38   :  { %280 = vmatpush.msrb.mxu1 %v91_v34  ;;  %321 = vmatpush.msrb.mxu3 %v153_v35 }
  0x39   :  { %262 = vmatpush.msrb.mxu0 %v55_v36  ;;  %303 = vmatpush.msrb.mxu2 %v117_v37 }
  0x3a   :  { %281 = vmatpush.msrb.mxu1 %v89_v38  ;;  %322 = vmatpush.msrb.mxu3 %v151_v39  ;;  %v741_v39 = vmov 1326507024  }
  0x3b   :  { %263 = vmatpush.msrb.mxu0 %v53_v40  ;;  %304 = vmatpush.msrb.mxu2 %v115_v41 }
  0x3c   :  { %282 = vmatpush.msrb.mxu1 %v87_v42  ;;  %323 = vmatpush.msrb.mxu3 %v149_v43 }
  0x3d   :  { %264 = vmatpush.msrb.mxu0 %v51_v44  ;;  %305 = vmatpush.msrb.mxu2 %v113_v45 }
  0x3e   :  { %283 = vmatpush.msrb.mxu1 %v85_v46  ;;  %324 = vmatpush.msrb.mxu3 %v147_v47 }
  0x3f   :  { %265 = vmatpush.msrb.mxu0 %v49_v48  ;;  %306 = vmatpush.msrb.mxu2 %v111_v49 }
  0x40   :  { %284 = vmatpush.msrb.mxu1 %v83_v50  ;;  %325 = vmatpush.msrb.mxu3 %v145_v51 }
  0x41   :  { %266 = vmatpush.msrb.mxu0 %v47_v52  ;;  %307 = vmatpush.msrb.mxu2 %v109_v53 }
  0x42   :  { %285 = vmatpush.msrb.mxu1 %v81_v54  ;;  %326 = vmatpush.msrb.mxu3 %v143_v55 }
  0x43   :  { %267 = vmatpush.msrb.mxu0 %v45_v56  ;;  %308 = vmatpush.msrb.mxu2 %v107_v57 }
  0x44   :  { %286 = vmatpush.msrb.mxu1 %v79_v58  ;;  %327 = vmatpush.msrb.mxu3 %v141_v59 }
  0x45   :  { %268 = vmatpush.msrb.mxu0 %v43_v60  ;;  %309 = vmatpush.msrb.mxu2 %v105_v61 }
  0x46   :  { %287 = vmatpush.msrb.mxu1 %v77_v63  ;;  %328 = vmatpush.msrb.mxu3 %v139_v0 }
  0x47   :  { %310 = vmatmul.f32.vlgmr.msrb.gmra.mxu2 %v779_v62  ;;  %269 = vmatpush.msrb.mxu0 %v41_v3  ;;  %v171_v3 = vperm.slane %v807_v7, 1 }
  0x48   :  { %288 = vmatpush.msrb.mxu1 %v75_v4  ;;  %329 = vmatpush.msrb.mxu3 %v137_v5 }
  0x49   :  { %270 = vmatmul.f32.vlgmr.msrb.gmra.mxu0 %v784_v1  ;;  %330 = vmatmul.f32.vlgmr.msrb.gmra.mxu3 %v789_v2 }
  0x4a   :  { %289 = vmatpush.msrb.mxu1 %v73_v6 }
  0x4b   :  { %290 = vmatmul.f32.vlgmr.msrb.gmra.mxu1 %v797_v8 }
  0xa4   :  { %v191_v10 = vpop.f32.mrf.mxu0 }
  0xa5   :  { %v192_v62 = vadd.f32 %v191_v10, %v170_v9 }
  0xa8   :  { %v211_v11 = vpop.f32.mrf.mxu1 }
  0xa9   :  { %v212_v12 = vadd.f32 %v211_v11, %v192_v62  ;;  %v231_v13 = vpop.f32.mrf.mxu2 }
  0xab   :  { %v232_v14 = vadd.f32 %v231_v13, %v212_v12  ;;  %v251_v15 = vpop.f32.mrf.mxu3 }
  0xad   :  { %v810_v1 = vadd.f32 %v251_v15, %v232_v14 }
  0xaf   :  { %v337_v2 = vand.u32 2139095040, %v810_v1  ;;  %v334_v8 = vand.u32 2147483647, %v810_v1 }
  0xb1   :  { %v338_v16 = vshrl.u32 %v337_v2, 23  ;;  %v341_v19 = vand.u32 8388607, %v334_v8 }
  0xb3   :  { %v690_v17 = vadd.s32 4294967169, %v338_v16  ;;  %v342_v22 = vor.u32 8388608, %v341_v19  ;;  %v742_v19 = vmov 0  }
  0xb5   :  { %v344_v18 = vadd.s32 1, %v690_v17  ;;  %v829_v41 = vshll.u32 %v342_v22, 8 }
  0xb7   :  { %vm345_vm0 = vcmp.gt.s32.totalorder %v344_v18, 0  ;;  %v383_v53 = vand.u32 65535, %v829_v41  ;;  %v384_v54 = vshrl.u32 %v829_v41, 16 }
  0xb8   :  { %v346_v20 = vsel %vm345_vm0, %v344_v18, 0 }
  0xb9   :  { %v348_v21 = vand.u32 31, %v346_v20  ;;  %v816_v23 = vshrl.u32 %v346_v20, 5 }
  0xbb   :  { %v349_v24 = vsub.s32 32, %v348_v21  ;;  %v351_v26 = vshll.u32 %v736_v25, %v348_v21  ;;  %v354_v28 = vshll.u32 %v737_v27, %v348_v21  ;;  %v357_v30 = vshll.u32 %v738_v29, %v348_v21 }
  0xbc   :  { %v360_v32 = vshll.u32 %v739_v31, %v348_v21  ;;  %v363_v34 = vshll.u32 %v740_v33, %v348_v21  ;;  %vm366_vm1 = vcmp.lt.s32.totalorder %v816_v23, 1  ;;  %vm369_vm2 = vcmp.lt.s32.totalorder %v816_v23, 4 }
  0xbd   :  { %v352_v35 = vshrl.u32 %v737_v27, %v349_v24  ;;  %v355_v36 = vshrl.u32 %v738_v29, %v349_v24  ;;  %v358_v37 = vshrl.u32 %v739_v31, %v349_v24  ;;  %v361_v38 = vshrl.u32 %v740_v33, %v349_v24 }
  0xbe   :  { %v364_v40 = vshrl.u32 %v741_v39, %v349_v24  ;;  %vm368_vm3 = vcmp.lt.s32.totalorder %v816_v23, 3  ;;  %vm367_vm4 = vcmp.lt.s32.totalorder %v816_v23, 2  ;;  %v350_v12 = vshrl.u32 %v736_v25, %v349_v24 }
  0xbf   :  { %v353_v42 = vor.u32 %v352_v35, %v351_v26  ;;  %v831_v43 = vor.u32 %v355_v36, %v354_v28  ;;  %v359_v44 = vor.u32 %v358_v37, %v357_v30  ;;  %v362_v45 = vor.u32 %v361_v38, %v360_v32 }
  0xc0   :  { %v365_v46 = vor.u32 %v364_v40, %v363_v34 }
  0xc1   :  { %v374_v47 = vsel %vm366_vm1, %v353_v42, %v831_v43  ;;  %v378_v48 = vsel %vm366_vm1, %v831_v43, %v359_v44  ;;  %v375_v49 = vsel %vm369_vm2, %v362_v45, 920167782  ;;  %v371_v16 = vsel %vm369_vm2, %v359_v44, 2102212464 }
  0xc2   :  { %v379_v50 = vsel %vm369_vm2, %v365_v46, 1326507024  ;;  %v376_v51 = vsel %vm368_vm3, %v359_v44, %v375_v49  ;;  %v370_v44 = vsel %vm366_vm1, %v350_v12, %v353_v42 }
  0xc3   :  { %v380_v52 = vsel %vm368_vm3, %v362_v45, %v379_v50  ;;  %v377_v55 = vsel %vm367_vm4, %v374_v47, %v376_v51  ;;  %v372_v47 = vsel %vm368_vm3, %v831_v43, %v371_v16 }
  0xc4   :  { %v381_v56 = vsel %vm367_vm4, %v378_v48, %v380_v52  ;;  %v407_v59 = vand.u32 65535, %v377_v55  ;;  %v408_v60 = vshrl.u32 %v377_v55, 16 }
  0xc5   :  { %v385_v57 = vand.u32 65535, %v381_v56  ;;  %v386_v58 = vshrl.u32 %v381_v56, 16 }
  0xc6   :  { %v409_v4 = vmul.u32 %v407_v59, %v383_v53  ;;  %v410_v5 = vmul.u32 %v408_v60, %v383_v53  ;;  %v411_v6 = vmul.u32 %v407_v59, %v384_v54  ;;  %v271_v9 = vpop.f32.mrf.mxu0  ;;  %v412_v13 = vmul.u32 %v408_v60, %v384_v54 }
  0xc7   :  { %v387_v61 = vmul.u32 %v385_v57, %v383_v53  ;;  %v388_v63 = vmul.u32 %v386_v58, %v383_v53  ;;  %v389_v0 = vmul.u32 %v385_v57, %v384_v54  ;;  %v390_v10 = vmul.u32 %v386_v58, %v384_v54 }
  0xc8   :  { %v413_v14 = vshll.u32 %v410_v5, 16  ;;  %v415_v15 = vshll.u32 %v411_v6, 16  ;;  %v291_v2 = vpop.f32.mrf.mxu1  ;;  %v272_v18 = vadd.f32 %v271_v9, %v171_v3  ;;  %v414_v32 = vshrl.u32 %v410_v5, 16 }
  0xc9   :  { %v391_v62 = vshll.u32 %v388_v63, 16  ;;  %v393_v11 = vshll.u32 %v389_v0, 16  ;;  %v392_v7 = vshrl.u32 %v388_v63, 16  ;;  %v394_v36 = vshrl.u32 %v389_v0, 16 }
  0xca   :  { %vm417_vm6 = vc.u32 %v409_v4, %v413_v14  ;;  %v419_v21 = vadd.s32 %v413_v14, %v409_v4  ;;  %v311_v22 = vpop.f32.mrf.mxu2  ;;  %v292_v28 = vadd.f32 %v291_v2, %v272_v18  ;;  %v416_v45 = vshrl.u32 %v411_v6, 16 }
  0xcb   :  { %vm395_vm5 = vc.u32 %v387_v61, %v391_v62  ;;  %v397_v17 = vadd.s32 %v391_v62, %v387_v61  ;;  %v418_v24 = vsel %vm417_vm6, 1, %v742_v19  ;;  %v373_v54 = vsel %vm367_vm4, %v370_v44, %v372_v47 }
  0xcc   :  { %v396_v20 = vsel %vm395_vm5, 1, %v742_v19  ;;  %v420_v34 = vadd.s32 %v418_v24, %v412_v13  ;;  %vm421_vm8 = vc.u32 %v419_v21, %v415_v15  ;;  %v331_v35 = vpop.f32.mrf.mxu3  ;;  %v312_v40 = vadd.f32 %v311_v22, %v292_v28 }
  0xcd   :  { %v398_v26 = vadd.s32 %v396_v20, %v390_v10  ;;  %vm399_vm7 = vc.u32 %v397_v17, %v393_v11  ;;  %v422_v38 = vsel %vm421_vm8, 1, %v742_v19  ;;  %v869_v49 = vadd.s32 %v419_v21, %v415_v15 }
  0xce   :  { %v400_v30 = vsel %vm399_vm7, 1, %v742_v19  ;;  %v424_v46 = vadd.s32 %v422_v38, %v420_v34  ;;  %v871_v50 = vadd.f32 %v331_v35, %v312_v40  ;;  %v427_v43 = vmul.u32 %v829_v41, %v373_v54 }
  0xcf   :  { %v402_v37 = vadd.s32 %v400_v30, %v398_v26  ;;  %vm336_vm6 = vcmp.lt.s32.totalorder %v810_v1, 0  ;;  %vm991_vm7 = vcmp.le.f32.partialorder %v334_v8, 0.7853982  ;;  %v651_v8 = vld [vmem:[%s1065_s3 + $0x38] sm:$0xff] }
  0xd0   :  { %v425_v51 = vadd.s32 %v424_v46, %v414_v32  ;;  %v492_v53 = vand.u32 2139095040, %v871_v50  ;;  %v489_v59 = vand.u32 2147483647, %v871_v50 }
  0xd1   :  { %v403_v48 = vadd.s32 %v402_v37, %v392_v7 }
  0xd2   :  { %v426_v42 = vadd.s32 %v425_v51, %v416_v45  ;;  %v493_v55 = vshrl.u32 %v492_v53, 23  ;;  %v496_v23 = vand.u32 8388607, %v489_v59 }
  0xd3   :  { %v873_v52 = vadd.s32 %v403_v48, %v394_v36 }
  0xd4   :  { %v430_v56 = vadd.s32 1, %v426_v42  ;;  %v693_v57 = vadd.s32 4294967169, %v493_v55  ;;  %v497_v41 = vor.u32 8388608, %v496_v23 }
  0xd5   :  { %vm429_vm9 = vc.u32 %v873_v52, %v869_v49 }
  0xd6   :  { %v431_v58 = vsel %vm429_vm9, %v430_v56, %v426_v42  ;;  %v499_v61 = vadd.s32 1, %v693_v57  ;;  %v915_v22 = vshll.u32 %v497_v41, 8 }
  0xd7   :  { %v432_v60 = vadd.s32 %v431_v58, %v427_v43  ;;  %v428_v58 = vadd.s32 %v869_v49, %v873_v52 }
  0xd8   :  { %vm500_vm10 = vcmp.gt.s32.totalorder %v499_v61, 0  ;;  %v538_v37 = vand.u32 65535, %v915_v22  ;;  %v539_v46 = vshrl.u32 %v915_v22, 16 }
  0xd9   :  { %v433_v63 = vadd.s32 536870912, %v432_v60  ;;  %v501_v0 = vsel %vm500_vm10, %v499_v61, 0  ;;  %vm491_vm10 = vcmp.lt.s32.totalorder %v871_v50, 0 }
  0xda   :  { %v503_v4 = vand.u32 31, %v501_v0  ;;  %v889_v9 = vshrl.u32 %v501_v0, 5 }
  0xdb   :  { %v884_v3 = vshrl.u32 %v433_v63, 30 }
  0xdc   :  { %v887_v6 = vsub.s32 32, %v503_v4  ;;  %v506_v10 = vshll.u32 %v736_v25, %v503_v4  ;;  %v509_v12 = vshll.u32 %v737_v27, %v503_v4  ;;  %v512_v13 = vshll.u32 %v738_v29, %v503_v4 }
  0xdd   :  { %v435_v5 = vshll.u32 %v884_v3, 30  ;;  %v515_v2 = vshll.u32 %v739_v31, %v503_v4  ;;  %vm521_vm12 = vcmp.lt.s32.totalorder %v889_v9, 1  ;;  %vm524_vm13 = vcmp.lt.s32.totalorder %v889_v9, 4 }
  0xde   :  { %v507_v11 = vshrl.u32 %v737_v27, %v887_v6  ;;  %v510_v14 = vshrl.u32 %v738_v29, %v887_v6  ;;  %v513_v15 = vshrl.u32 %v739_v31, %v887_v6  ;;  %v516_v16 = vshrl.u32 %v740_v33, %v887_v6 }
  0xdf   :  { %v892_v62 = vsub.s32 %v432_v60, %v435_v5  ;;  %v518_v27 = vshll.u32 %v740_v33, %v503_v4  ;;  %v519_v21 = vshrl.u32 %v741_v39, %v887_v6  ;;  %vm523_vm14 = vcmp.lt.s32.totalorder %v889_v9, 3 }
  0xe0   :  { %v907_v18 = vor.u32 %v507_v11, %v506_v10  ;;  %v910_v7 = vor.u32 %v510_v14, %v509_v12  ;;  %v514_v20 = vor.u32 %v513_v15, %v512_v13  ;;  %v517_v29 = vor.u32 %v516_v16, %v515_v2 }
  0xe1   :  { %vm437_vm11 = vcmp.lt.s32.totalorder %v892_v62, 0  ;;  %v438_v17 = vsub.s32 0, %v892_v62  ;;  %v520_v24 = vor.u32 %v519_v21, %v518_v27  ;;  %vm522_vm15 = vcmp.lt.s32.totalorder %v889_v9, 2 }
  0xe2   :  { %v529_v33 = vsel %vm521_vm12, %v907_v18, %v910_v7  ;;  %v530_v39 = vsel %vm524_vm13, %v517_v29, 920167782  ;;  %v533_v28 = vsel %vm521_vm12, %v910_v7, %v514_v20  ;;  %v526_v49 = vsel %vm524_vm13, %v514_v20, 2102212464 }
  0xe3   :  { %v439_v31 = vsel %vm437_vm11, %v438_v17, %v892_v62  ;;  %v531_v32 = vsel %vm523_vm14, %v514_v20, %v530_v39  ;;  %v534_v34 = vsel %vm524_vm13, %v520_v24, 1326507024  ;;  %vm1033_vm11 = vcmp.le.f32.partialorder %v489_v59, 0.7853982 }
  0xe4   :  { %v440_v26 = vclz %v439_v31  ;;  %v532_v35 = vsel %vm522_vm15, %v529_v33, %v531_v32  ;;  %v535_v36 = vsel %vm523_vm14, %v517_v29, %v534_v34  ;;  %v505_v29 = vshrl.u32 %v736_v25, %v887_v6 }
  0xe5   :  { %v536_v38 = vsel %vm522_vm15, %v533_v28, %v535_v36  ;;  %v562_v40 = vand.u32 65535, %v532_v35  ;;  %v563_v44 = vshrl.u32 %v532_v35, 16  ;;  %v527_v28 = vsel %vm523_vm14, %v910_v7, %v526_v49  ;;  %v659_v36 = vld [vmem:[%s1065_s3 + $0x78] sm:$0xff] }
  0xe6   :  { %v691_v30 = vadd.s32 4294967294, %v440_v26  ;;  %v540_v47 = vand.u32 65535, %v536_v38  ;;  %v541_v48 = vshrl.u32 %v536_v38, 16  ;;  %v525_v39 = vsel %vm521_vm12, %v505_v29, %v907_v18  ;;  %664 = vmatpush.msra.mxu0 %v659_v36  ;;  %v658_v38 = vld [vmem:[%s1065_s3 + $0x70] sm:$0xff]  ;;  %v647_v49 = vld [vmem:[%s1065_s3 + $0x18] sm:$0xff] }
  0xe7   :  { %v565_v55 = vmul.u32 %v563_v44, %v538_v37  ;;  %v566_v56 = vmul.u32 %v562_v40, %v539_v46  ;;  %v564_v61 = vmul.u32 %v562_v40, %v538_v37  ;;  %v567_v10 = vmul.u32 %v563_v44, %v539_v46 }
  0xe8   :  { %vm692_vm0 = vcmp.lt.s32.totalorder %v691_v30, 0  ;;  %v543_v53 = vmul.u32 %v541_v48, %v538_v37  ;;  %v544_v54 = vmul.u32 %v540_v47, %v539_v46  ;;  %v542_v43 = vmul.u32 %v540_v47, %v538_v37  ;;  %665 = vmatpush.msra.mxu0 %v658_v38  ;;  %v656_v47 = vld [vmem:[%s1065_s3 + $0x60] sm:$0xff] }
  0xe9   :  { %v443_v45 = vsel %vm692_vm0, 0, %v691_v30  ;;  %v568_v63 = vshll.u32 %v565_v55, 16  ;;  %v545_v23 = vmul.u32 %v541_v48, %v539_v46  ;;  %v570_v11 = vshll.u32 %v566_v56, 16 }
  0xea   :  { %v448_v51 = vsub.s32 4294967266, %v443_v45  ;;  %v546_v57 = vshll.u32 %v543_v53, 16  ;;  %v444_v60 = vsub.s32 32, %v443_v45  ;;  %v548_v0 = vshll.u32 %v544_v54, 16 }
  0xeb   :  { %vm572_vm3 = vc.u32 %v564_v61, %v568_v63  ;;  %v574_v13 = vadd.s32 %v568_v63, %v564_v61  ;;  %v547_v2 = vshrl.u32 %v543_v53, 16  ;;  %v445_v27 = vshll.u32 %v892_v62, %v443_v45  ;;  %v657_v45 = vld [vmem:[%s1065_s3 + $0x68] sm:$0xff] }
  0xec   :  { %v449_v42 = vadd.s32 127, %v448_v51  ;;  %vm550_vm1 = vc.u32 %v542_v43, %v546_v57  ;;  %v552_v4 = vadd.s32 %v546_v57, %v542_v43  ;;  %v446_v14 = vshrl.u32 %v428_v58, %v444_v60  ;;  %666 = vmatpush.msra.mxu0 %v657_v45  ;;  %v655_v51 = vld [vmem:[%s1065_s3 + $0x58] sm:$0xff]  ;;  %v652_v60 = vld [vmem:[%s1065_s3 + $0x40] sm:$0xff] }
  0xed   :  { %v551_v41 = vsel %vm550_vm1, 1, %v742_v19  ;;  %v573_v15 = vsel %vm572_vm3, 1, %v742_v19  ;;  %vm576_vm4 = vc.u32 %v574_v13, %v570_v11  ;;  %v549_v21 = vshrl.u32 %v544_v54, 16  ;;  %v654_v54 = vld [vmem:[%s1065_s3 + $0x50] sm:$0xff] }
  0xee   :  { %v450_v5 = vshll.u32 %v449_v42, 23  ;;  %v553_v12 = vadd.s32 %v551_v41, %v545_v23  ;;  %vm554_vm2 = vc.u32 %v552_v4, %v548_v0  ;;  %v575_v17 = vadd.s32 %v573_v15, %v567_v10  ;;  %667 = vmatpush.msra.mxu0 %v656_v47  ;;  %v650_v0 = vld [vmem:[%s1065_s3 + $0x30] sm:$0xff] }
  0xef   :  { %v555_v52 = vsel %vm554_vm2, 1, %v742_v19  ;;  %v577_v31 = vsel %vm576_vm4, 1, %v742_v19  ;;  %v569_v33 = vshrl.u32 %v565_v55, 16  ;;  %v447_v30 = vor.u32 %v446_v14, %v445_v27  ;;  %v645_v27 = vld [vmem:[%s1065_s3 + $0x8] sm:$0xff] }
  0xf0   :  { %v557_v16 = vadd.s32 %v555_v52, %v553_v12  ;;  %v451_v26 = vor.u32 4788187, %v450_v5  ;;  %v579_v20 = vadd.s32 %v577_v31, %v575_v17  ;;  %v571_v32 = vshrl.u32 %v566_v56, 16  ;;  %668 = vmatpush.msra.mxu0 %v655_v51  ;;  %v653_v56 = vld [vmem:[%s1065_s3 + $0x48] sm:$0xff]  ;;  %v646_v52 = vld [vmem:[%s1065_s3 + $0x10] sm:$0xff] }
  0xf1   :  { %v578_v25 = vadd.s32 %v574_v13, %v570_v11  ;;  %v528_v19 = vsel %vm522_vm15, %v525_v39, %v527_v28  ;;  %v454_v18 = vcvt.s32.f32 %v447_v30  ;;  %v649_v5 = vld [vmem:[%s1065_s3 + $0x28] sm:$0xff]  ;;  %v648_v11 = vld [vmem:[%s1065_s3 + $0x20] sm:$0xff]  ;;  %vm477_vm2 = vweird.f32 %v810_v1 }
  0xf2   :  { %v558_v24 = vadd.s32 %v557_v16, %v547_v2  ;;  %v580_v34 = vadd.s32 %v579_v20, %v569_v33  ;;  %v452_v6 = vand.u32 2147483647, %v451_v26  ;;  %v582_v7 = vmul.u32 %v915_v22, %v528_v19  ;;  %669 = vmatpush.msra.mxu0 %v654_v54  ;;  %v644_v26 = vld [vmem:[%s1065_s3] sm:$0xff] }
  0xf3   :  { %vm632_vm3 = vweird.f32 %v871_v50 }
  0xf4   :  { %v559_v62 = vadd.s32 %v558_v24, %v549_v21  ;;  %v581_v35 = vadd.s32 %v580_v34, %v571_v32  ;;  %v455_v40 = vmul.f32 %v454_v18, %v452_v6  ;;  %670 = vmatpush.msra.mxu0 %v653_v56  ;;  %v458_v32 = vsub.s32 4, %v884_v3 }
  0xf6   :  { %vm584_vm5 = vc.u32 %v559_v62, %v578_v25  ;;  %v585_v37 = vadd.s32 1, %v581_v35  ;;  %v456_v48 = vxor.u32 2147483648, %v455_v40  ;;  %671 = vmatpush.msra.mxu0 %v652_v60  ;;  %v583_v12 = vadd.s32 %v578_v25, %v559_v62 }
  0xf7   :  { %v459_v36 = vsel %vm336_vm6, %v458_v32, %v884_v3 }
  0xf8   :  { %v586_v44 = vsel %vm584_vm5, %v585_v37, %v581_v35  ;;  %v457_v42 = vsel %vm336_vm6, %v456_v48, %v455_v40  ;;  %672 = vmatpush.msra.mxu0 %v651_v8  ;;  %v461_v38 = vsel %vm991_vm7, 0, %v459_v36 }
  0xf9   :  { %v587_v9 = vadd.s32 %v586_v44, %v582_v7  ;;  %v998_v57 = vsel %vm991_vm7, %v810_v1, %v457_v42  ;;  %v478_v48 = vadd.s32 3, %v461_v38 }
  0xfa   :  { %v462_v63 = vmul.f32 %v998_v57, %v998_v57  ;;  %673 = vmatpush.msra.mxu0 %v650_v0 }
  0xfb   :  { %v588_v46 = vadd.s32 536870912, %v587_v9  ;;  %v479_v43 = vand.u32 3, %v478_v48 }
  0xfc   :  { %v470_v41 = vmul.f32 -0.00019511016, %v462_v63  ;;  %674 = vmatpush.msra.mxu0 %v649_v5  ;;  %v463_v31 = vmul.f32 -0.001358992, %v462_v63 }
  0xfd   :  { %v974_v22 = vshrl.u32 %v588_v46, 30  ;;  %vm481_vm12 = vcmp.eq.s32.totalorder %v479_v43, 0  ;;  %vm484_vm13 = vcmp.eq.s32.totalorder %v479_v43, 2  ;;  %vm480_vm14 = vcmp.lt.s32.totalorder %v479_v43, 2 }
  0xfe   :  { %675 = vmatpush.msra.mxu0 %v648_v11  ;;  %v471_v15 = vadd.f32 0.008332121, %v470_v41  ;;  %v464_v28 = vadd.f32 0.041655596, %v463_v31 }
  0xff   :  { %v590_v53 = vshll.u32 %v974_v22, 30 }
 0x100   :  { %676 = vmatpush.msra.mxu0 %v647_v49  ;;  %v472_v24 = vmul.f32 %v471_v15, %v462_v63  ;;  %v465_v25 = vmul.f32 %v464_v28, %v462_v63 }
 0x101   :  { %v591_v55 = vsub.s32 %v587_v9, %v590_v53  ;;  %v613_v9 = vsub.s32 4, %v974_v22 }
 0x102   :  { %677 = vmatpush.msra.mxu0 %v646_v52  ;;  %v473_v30 = vadd.f32 -0.16666654, %v472_v24  ;;  %v466_v7 = vadd.f32 -0.4999988, %v465_v25 }
 0x103   :  { %vm592_vm8 = vcmp.lt.s32.totalorder %v591_v55, 0  ;;  %v593_v58 = vsub.s32 0, %v591_v55  ;;  %v614_v54 = vsel %vm491_vm10, %v613_v9, %v974_v22 }
 0x104   :  { %678 = vmatpush.msra.mxu0 %v645_v27  ;;  %v474_v6 = vmul.f32 %v473_v30, %v462_v63  ;;  %v467_v46 = vmul.f32 %v466_v7, %v462_v63  ;;  %v616_v60 = vsel %vm1033_vm11, 0, %v614_v54 }
 0x105   :  { %v594_v61 = vsel %vm592_vm8, %v593_v58, %v591_v55 }
 0x106   :  { %v595_v23 = vclz %v594_v61  ;;  %679 = vmatpush.msra.mxu0 %v644_v26  ;;  %v475_v59 = vadd.f32 1.0, %v474_v6 }
 0x108   :  { %v694_v4 = vadd.s32 4294967294, %v595_v23  ;;  %v476_v3 = vmul.f32 %v475_v59, %v998_v57  ;;  %v633_v57 = vand.u32 3, %v616_v60 }
 0x10a   :  { %vm695_vm9 = vcmp.lt.s32.totalorder %v694_v4, 0  ;;  %v482_v58 = vxor.u32 2147483648, %v476_v3  ;;  %vm635_vm15 = vcmp.eq.s32.totalorder %v633_v57, 0  ;;  %vm638_vm0 = vcmp.eq.s32.totalorder %v633_v57, 2 }
 0x10b   :  { %v598_v10 = vsel %vm695_vm9, 0, %v694_v4  ;;  %vm634_vm1 = vcmp.lt.s32.totalorder %v633_v57, 2 }
 0x10c   :  { %v599_v13 = vsub.s32 32, %v598_v10  ;;  %v603_v14 = vsub.s32 4294967266, %v598_v10  ;;  %v600_v2 = vshll.u32 %v591_v55, %v598_v10  ;;  %v468_v55 = vadd.f32 1.0, %v467_v46 }
 0x10e   :  { %v601_v16 = vshrl.u32 %v583_v12, %v599_v13  ;;  %v604_v17 = vadd.s32 127, %v603_v14  ;;  %v485_v23 = vxor.u32 2147483648, %v468_v55  ;;  %v483_v5 = vsel %vm481_vm12, %v468_v55, %v482_v58 }
 0x110   :  { %v602_v29 = vor.u32 %v601_v16, %v600_v2  ;;  %v605_v21 = vshll.u32 %v604_v17, 23  ;;  %v486_v10 = vsel %vm484_vm13, %v485_v23, %v476_v3  ;;  %v706_v2 = vld [vmem:[%s1066_s4] ss:$0 sm:$0xff] }
 0x111   :  { %v487_v11 = vsel %vm480_vm14, %v483_v5, %v486_v10 }
 0x112   :  { %v606_v33 = vor.u32 4788187, %v605_v21  ;;  %v609_v39 = vcvt.s32.f32 %v602_v29  ;;  %v488_v49 = vsel %vm477_vm2, nan, %v487_v11 }
 0x114   :  { %v607_v20 = vand.u32 2147483647, %v606_v33 }
 0x116   :  { %v610_v62 = vmul.f32 %v609_v39, %v607_v20 }
 0x118   :  { %v611_v34 = vxor.u32 2147483648, %v610_v62 }
 0x11a   :  { %v612_v35 = vsel %vm491_vm10, %v611_v34, %v610_v62 }
 0x11b   :  { %v615_v18 = vsel %vm1033_vm11, %v871_v50, %v612_v35 }
 0x11c   :  { %v617_v37 = vmul.f32 %v615_v18, %v615_v18 }
 0x11e   :  { %v625_v40 = vmul.f32 -0.00019511016, %v617_v37  ;;  %v618_v44 = vmul.f32 -0.001358992, %v617_v37 }
 0x120   :  { %v626_v45 = vadd.f32 0.008332121, %v625_v40  ;;  %v619_v47 = vadd.f32 0.041655596, %v618_v44 }
 0x122   :  { %v627_v51 = vmul.f32 %v626_v45, %v617_v37  ;;  %v620_v53 = vmul.f32 %v619_v47, %v617_v37 }
 0x124   :  { %v628_v42 = vadd.f32 -0.16666654, %v627_v51  ;;  %v621_v56 = vadd.f32 -0.4999988, %v620_v53 }
 0x126   :  { %v629_v61 = vmul.f32 %v628_v42, %v617_v37  ;;  %v622_v8 = vmul.f32 %v621_v56, %v617_v37 }
 0x128   :  { %v630_v63 = vadd.f32 1.0, %v629_v61  ;;  %v623_v0 = vadd.f32 1.0, %v622_v8 }
 0x12a   :  { %v631_v4 = vmul.f32 %v630_v63, %v615_v18  ;;  %v639_v41 = vxor.u32 2147483648, %v623_v0 }
 0x12c   :  { %v636_v22 = vxor.u32 2147483648, %v631_v4  ;;  %v640_v13 = vsel %vm638_vm0, %v639_v41, %v631_v4 }
 0x12e   :  { %v637_v12 = vsel %vm635_vm15, %v623_v0, %v636_v22 }
 0x12f   :  { %v641_v14 = vsel %vm634_vm1, %v637_v12, %v640_v13 }
 0x130   :  { %v642_v52 = vsel %vm632_vm3, nan, %v641_v14 }
 0x131   :  { %v643_v15 = vadd.f32 %v642_v52, %v488_v49 }
 0x133   :  { %680 = vmatmul.f32.vlgmr.msra.gmra.mxu0 %v643_v15 }
 0x1b0   :  { %v681_v16 = vpop.f32.mrf.mxu0 }
 0x1b1   :  { %v682_v17 = vadd.f32 %v706_v2, %v681_v16 }
 0x1b3   :  { %684 = vst [vmem:[%s1067_s5] sm:$0xff] %v682_v17 }
 0x1b4   :  { %689 = vsyncpa [#allocation3], 1 }

</bundles_post_ra>
